<compile_context>
chip_gen: v7x
topology: tpu7x:2x2x1
jax: 0.10.0
libtpu: 0.0.40
codegen_flags: <defaults>
</compile_context>

<pallas_src>
import functools

import jax
import jax.numpy as jnp
from jax.experimental import pallas as pl
from jax.experimental.pallas import tpu as pltpu

LANE = 128     # TPU lane width
SUBLANE = 8    # TPU sublane width


def _round_up(n, m):
    return ((n + m - 1) // m) * m


def mlp4_kernel(x_ref, w1_ref, b1_ref, w2_ref, b2_ref, w3_ref, b3_ref,
                w4_ref, b4_ref, o_ref):
    # x arrives at its natural f32 width (K = input_dim, no padded zero
    # columns); cast to bf16 in-kernel so the MXU sees bf16 operands.
    h = x_ref[...].astype(jnp.bfloat16)

    h = jnp.dot(h, w1_ref[...], preferred_element_type=jnp.float32) + b1_ref[...]
    h = jnp.maximum(h, 0.0).astype(jnp.bfloat16)

    h = jnp.dot(h, w2_ref[...], preferred_element_type=jnp.float32) + b2_ref[...]
    h = jnp.maximum(h, 0.0).astype(jnp.bfloat16)

    h = jnp.dot(h, w3_ref[...], preferred_element_type=jnp.float32) + b3_ref[...]
    h = jnp.maximum(h, 0.0).astype(jnp.bfloat16)

    out = jnp.dot(h, w4_ref[...], preferred_element_type=jnp.float32) + b4_ref[...]
    o_ref[...] = out.astype(o_ref.dtype)   # lane-dense bf16 store


def pad_params_for_kernel(params):
    """Zero-pad hidden/output feature dims to a multiple of 128 and cast
    weights to bf16 (biases stay f32). Layer 1's input (K) dim is NOT padded —
    x is read at its natural width. Done once, outside the jitted forward."""
    padded = {}
    for idx in range(1, 5):
        w = params[f"w{idx}"]
        b = params[f"b{idx}"]
        d_in, d_out = w.shape
        pi = d_in if idx == 1 else _round_up(d_in, LANE)  # keep K natural for layer 1
        po = _round_up(d_out, LANE)
        padded[f"w{idx}"] = jnp.pad(
            w, ((0, pi - d_in), (0, po - d_out))).astype(jnp.bfloat16)
        padded[f"b{idx}"] = jnp.pad(
            b, ((0, 0), (0, po - d_out))).astype(jnp.float32)
    return padded


@functools.partial(jax.jit,
                   static_argnames=("output_dim", "block_b", "out_dtype"))
def mlp4_forward(x, padded_params, output_dim, block_b=2048,
                 out_dtype=jnp.bfloat16):
    """Fused MLP4 forward pass.

    x:              (batch, input_dim) float32 — passed at natural shape.
    padded_params:  output of pad_params_for_kernel (128-padded, bf16 weights).
    output_dim:     logical (unpadded) output feature count.
    block_b:        batch tile; default 2048, sweep 1024-4096 for big batches.
    out_dtype:      kernel output dtype (default bf16 to halve writeback).
    """
    batch, input_dim = x.shape
    p = padded_params
    out_pad = p["w4"].shape[1]

    # Tile clamp: multiple of 8 (sublane), never exceed the sublane-rounded
    # half-batch so the grid has >=2 programs whenever batch > 8 (v7x has 2
    # TensorCores sharded across the "parallel" grid axis).
    block_b = max(SUBLANE, min(block_b, _round_up(pl.cdiv(batch, 2), SUBLANE)))
    grid = (pl.cdiv(batch, block_b),)   # final partial block is compiler-padded

    def rep(shape):
        # Full-array block, replicated (constant block index) across the batch
        # grid axis — fetched once by the pipeliner.
        return pl.BlockSpec(shape, lambda i: (0,) * len(shape))

    out_padded = pl.pallas_call(
        mlp4_kernel,
        out_shape=jax.ShapeDtypeStruct((batch, out_pad), out_dtype),
        grid=grid,
        in_specs=[
            pl.BlockSpec((block_b, input_dim), lambda i: (i, 0)),
            rep(p["w1"].shape), rep(p["b1"].shape),
            rep(p["w2"].shape), rep(p["b2"].shape),
            rep(p["w3"].shape), rep(p["b3"].shape),
            rep(p["w4"].shape), rep(p["b4"].shape),
        ],
        out_specs=pl.BlockSpec((block_b, out_pad), lambda i: (i, 0)),
        compiler_params=pltpu.CompilerParams(
            dimension_semantics=("parallel",)),
    )(x, p["w1"], p["b1"], p["w2"], p["b2"],
      p["w3"], p["b3"], p["w4"], p["b4"])

    # Slice off the zero-padded output columns. If the consumer can use the
    # 128-padded bf16 slab directly, return out_padded instead and slice lazily
    # at the use site to save another HBM pass.
    return out_padded[:, :output_dim]


def init_mlp4_params(key, input_dim, output_dim):
    dims = [(input_dim, 64), (64, 128), (128, 64), (64, output_dim)]
    params = {}
    for idx, (d_in, d_out) in enumerate(dims, start=1):
        key, kw, kb = jax.random.split(key, 3)
        bound = 1.0 / jnp.sqrt(jnp.float32(d_in))
        params[f"w{idx}"] = jax.random.uniform(
            kw, (d_in, d_out), jnp.float32, -bound, bound)
        params[f"b{idx}"] = jax.random.uniform(
            kb, (1, d_out), jnp.float32, -bound, bound)
    return params


def mlp4_reference(x, params):
    h = x
    for idx in range(1, 4):
        h = jnp.maximum(h @ params[f"w{idx}"] + params[f"b{idx}"], 0.0)
    return h @ params["w4"] + params["b4"]


if __name__ == "__main__":
    input_dim, output_dim, batch = 32, 16, 128

    key = jax.random.PRNGKey(0)
    key, kx = jax.random.split(key)
    x = jax.random.normal(kx, (batch, input_dim), jnp.float32)
    params = init_mlp4_params(key, input_dim, output_dim)
    padded_params = pad_params_for_kernel(params)

    # Default block_b=2048 is clamped to 64 here (half of batch=128, rounded to
    # a sublane multiple): 2-program grid -> exercises pipelining and both v7x
    # TensorCores while keeping the smoke test tiny.
    out = mlp4_forward(x, padded_params, output_dim)
    out = jax.block_until_ready(out)

    ref = mlp4_reference(x, params)
    assert out.shape == (batch, output_dim), out.shape
    assert out.dtype == jnp.bfloat16, out.dtype
    # bf16 matmul operands + bf16 output store (f32 accumulation) vs f32 ref.
    err = float(jnp.max(jnp.abs(out.astype(jnp.float32) - ref)))
    assert err < 1e-1, err

    print("KERNEL_OK")
</pallas_src>

<mosaic_0001>
module attributes {stable_mosaic.version = 11 : i64} {
  func.func @mlp4_kernel(%arg0: i32, %arg1: memref<64x32xf32, #tpu.memory_space<vmem>>, %arg2: memref<32x128xbf16, #tpu.memory_space<vmem>>, %arg3: memref<1x128xf32, #tpu.memory_space<vmem>>, %arg4: memref<128x128xbf16, #tpu.memory_space<vmem>>, %arg5: memref<1x128xf32, #tpu.memory_space<vmem>>, %arg6: memref<128x128xbf16, #tpu.memory_space<vmem>>, %arg7: memref<1x128xf32, #tpu.memory_space<vmem>>, %arg8: memref<128x128xbf16, #tpu.memory_space<vmem>>, %arg9: memref<1x128xf32, #tpu.memory_space<vmem>>, %arg10: memref<64x128xbf16, #tpu.memory_space<vmem>>) attributes {dimension_semantics = [#tpu.dimension_semantics<parallel>], iteration_bounds = array<i64: 2>, scalar_prefetch = 0 : i64, scratch_operands = 0 : i64, tpu.core_type = #tpu.core_type<tc>, window_params = [{transform_indices = @transform_0, window_bounds = array<i64: 64, 32>}, {pipeline_mode = #tpu.pipeline_mode<synchronous>, transform_indices = @transform_1, window_bounds = array<i64: 32, 128>}, {pipeline_mode = #tpu.pipeline_mode<synchronous>, transform_indices = @transform_2, window_bounds = array<i64: 1, 128>}, {pipeline_mode = #tpu.pipeline_mode<synchronous>, transform_indices = @transform_3, window_bounds = array<i64: 128, 128>}, {pipeline_mode = #tpu.pipeline_mode<synchronous>, transform_indices = @transform_4, window_bounds = array<i64: 1, 128>}, {pipeline_mode = #tpu.pipeline_mode<synchronous>, transform_indices = @transform_5, window_bounds = array<i64: 128, 128>}, {pipeline_mode = #tpu.pipeline_mode<synchronous>, transform_indices = @transform_6, window_bounds = array<i64: 1, 128>}, {pipeline_mode = #tpu.pipeline_mode<synchronous>, transform_indices = @transform_7, window_bounds = array<i64: 128, 128>}, {pipeline_mode = #tpu.pipeline_mode<synchronous>, transform_indices = @transform_8, window_bounds = array<i64: 1, 128>}, {transform_indices = @transform_9, window_bounds = array<i64: 64, 128>}]} {
    %c0 = arith.constant 0 : index
    %c0_0 = arith.constant 0 : index
    %0 = vector.load %arg1[%c0, %c0_0] : memref<64x32xf32, #tpu.memory_space<vmem>>, vector<64x32xf32>
    %1 = arith.truncf %0 : vector<64x32xf32> to vector<64x32xbf16>
    %c0_1 = arith.constant 0 : index
    %c0_2 = arith.constant 0 : index
    %2 = vector.load %arg2[%c0_1, %c0_2] : memref<32x128xbf16, #tpu.memory_space<vmem>>, vector<32x128xbf16>
    %cst = arith.constant dense<0.000000e+00> : vector<64x128xf32>
    %3 = tpu.matmul %1, %2, %cst {dimension_numbers = #tpu.dot_dimension_numbers<[1], [0], [0], [1], [0, 0, 1, 1], [], []>} : vector<64x32xbf16>, vector<32x128xbf16>, vector<64x128xf32> -> vector<64x128xf32>
    %c0_3 = arith.constant 0 : index
    %c0_4 = arith.constant 0 : index
    %4 = vector.load %arg3[%c0_3, %c0_4] : memref<1x128xf32, #tpu.memory_space<vmem>>, vector<1x128xf32>
    %5 = vector.broadcast %4 : vector<1x128xf32> to vector<64x128xf32>
    %6 = arith.addf %3, %5 : vector<64x128xf32>
    %cst_5 = arith.constant 0.000000e+00 : f32
    %7 = vector.broadcast %cst_5 : f32 to vector<64x128xf32>
    %8 = arith.maximumf %6, %7 : vector<64x128xf32>
    %9 = arith.truncf %8 : vector<64x128xf32> to vector<64x128xbf16>
    %c0_6 = arith.constant 0 : index
    %c0_7 = arith.constant 0 : index
    %10 = vector.load %arg4[%c0_6, %c0_7] : memref<128x128xbf16, #tpu.memory_space<vmem>>, vector<128x128xbf16>
    %cst_8 = arith.constant dense<0.000000e+00> : vector<64x128xf32>
    %11 = tpu.matmul %9, %10, %cst_8 {dimension_numbers = #tpu.dot_dimension_numbers<[1], [0], [0], [1], [0, 0, 1, 1], [], []>} : vector<64x128xbf16>, vector<128x128xbf16>, vector<64x128xf32> -> vector<64x128xf32>
    %c0_9 = arith.constant 0 : index
    %c0_10 = arith.constant 0 : index
    %12 = vector.load %arg5[%c0_9, %c0_10] : memref<1x128xf32, #tpu.memory_space<vmem>>, vector<1x128xf32>
    %13 = vector.broadcast %12 : vector<1x128xf32> to vector<64x128xf32>
    %14 = arith.addf %11, %13 : vector<64x128xf32>
    %cst_11 = arith.constant 0.000000e+00 : f32
    %15 = vector.broadcast %cst_11 : f32 to vector<64x128xf32>
    %16 = arith.maximumf %14, %15 : vector<64x128xf32>
    %17 = arith.truncf %16 : vector<64x128xf32> to vector<64x128xbf16>
    %c0_12 = arith.constant 0 : index
    %c0_13 = arith.constant 0 : index
    %18 = vector.load %arg6[%c0_12, %c0_13] : memref<128x128xbf16, #tpu.memory_space<vmem>>, vector<128x128xbf16>
    %cst_14 = arith.constant dense<0.000000e+00> : vector<64x128xf32>
    %19 = tpu.matmul %17, %18, %cst_14 {dimension_numbers = #tpu.dot_dimension_numbers<[1], [0], [0], [1], [0, 0, 1, 1], [], []>} : vector<64x128xbf16>, vector<128x128xbf16>, vector<64x128xf32> -> vector<64x128xf32>
    %c0_15 = arith.constant 0 : index
    %c0_16 = arith.constant 0 : index
    %20 = vector.load %arg7[%c0_15, %c0_16] : memref<1x128xf32, #tpu.memory_space<vmem>>, vector<1x128xf32>
    %21 = vector.broadcast %20 : vector<1x128xf32> to vector<64x128xf32>
    %22 = arith.addf %19, %21 : vector<64x128xf32>
    %cst_17 = arith.constant 0.000000e+00 : f32
    %23 = vector.broadcast %cst_17 : f32 to vector<64x128xf32>
    %24 = arith.maximumf %22, %23 : vector<64x128xf32>
    %25 = arith.truncf %24 : vector<64x128xf32> to vector<64x128xbf16>
    %c0_18 = arith.constant 0 : index
    %c0_19 = arith.constant 0 : index
    %26 = vector.load %arg8[%c0_18, %c0_19] : memref<128x128xbf16, #tpu.memory_space<vmem>>, vector<128x128xbf16>
    %cst_20 = arith.constant dense<0.000000e+00> : vector<64x128xf32>
    %27 = tpu.matmul %25, %26, %cst_20 {dimension_numbers = #tpu.dot_dimension_numbers<[1], [0], [0], [1], [0, 0, 1, 1], [], []>} : vector<64x128xbf16>, vector<128x128xbf16>, vector<64x128xf32> -> vector<64x128xf32>
    %c0_21 = arith.constant 0 : index
    %c0_22 = arith.constant 0 : index
    %28 = vector.load %arg9[%c0_21, %c0_22] : memref<1x128xf32, #tpu.memory_space<vmem>>, vector<1x128xf32>
    %29 = vector.broadcast %28 : vector<1x128xf32> to vector<64x128xf32>
    %30 = arith.addf %27, %29 : vector<64x128xf32>
    %31 = arith.truncf %30 : vector<64x128xf32> to vector<64x128xbf16>
    %c0_23 = arith.constant 0 : index
    %c0_24 = arith.constant 0 : index
    %32 = vector.load %arg10[%c0_23, %c0_24] : memref<64x128xbf16, #tpu.memory_space<vmem>>, vector<64x128xbf16>
    tpu.vector_store %arg10[%c0_23, %c0_24], %31 {strides = array<i32>} : memref<64x128xbf16, #tpu.memory_space<vmem>>, vector<64x128xbf16>,
    return
  }
  func.func @transform_0(%arg0: i32) -> (i32, i32) {
    %c0_i32 = arith.constant 0 : i32
    %c0_i32_0 = arith.constant 0 : i32
    return %arg0, %c0_i32 : i32, i32
  }
  func.func @transform_1(%arg0: i32) -> (i32, i32) {
    %c0_i32 = arith.constant 0 : i32
    %c0_i32_0 = arith.constant 0 : i32
    %c0_i32_1 = arith.constant 0 : i32
    return %c0_i32, %c0_i32_0 : i32, i32
  }
  func.func @transform_2(%arg0: i32) -> (i32, i32) {
    %c0_i32 = arith.constant 0 : i32
    %c0_i32_0 = arith.constant 0 : i32
    %c0_i32_1 = arith.constant 0 : i32
    return %c0_i32, %c0_i32_0 : i32, i32
  }
  func.func @transform_3(%arg0: i32) -> (i32, i32) {
    %c0_i32 = arith.constant 0 : i32
    %c0_i32_0 = arith.constant 0 : i32
    %c0_i32_1 = arith.constant 0 : i32
    return %c0_i32, %c0_i32_0 : i32, i32
  }
  func.func @transform_4(%arg0: i32) -> (i32, i32) {
    %c0_i32 = arith.constant 0 : i32
    %c0_i32_0 = arith.constant 0 : i32
    %c0_i32_1 = arith.constant 0 : i32
    return %c0_i32, %c0_i32_0 : i32, i32
  }
  func.func @transform_5(%arg0: i32) -> (i32, i32) {
    %c0_i32 = arith.constant 0 : i32
    %c0_i32_0 = arith.constant 0 : i32
    %c0_i32_1 = arith.constant 0 : i32
    return %c0_i32, %c0_i32_0 : i32, i32
  }
  func.func @transform_6(%arg0: i32) -> (i32, i32) {
    %c0_i32 = arith.constant 0 : i32
    %c0_i32_0 = arith.constant 0 : i32
    %c0_i32_1 = arith.constant 0 : i32
    return %c0_i32, %c0_i32_0 : i32, i32
  }
  func.func @transform_7(%arg0: i32) -> (i32, i32) {
    %c0_i32 = arith.constant 0 : i32
    %c0_i32_0 = arith.constant 0 : i32
    %c0_i32_1 = arith.constant 0 : i32
    return %c0_i32, %c0_i32_0 : i32, i32
  }
  func.func @transform_8(%arg0: i32) -> (i32, i32) {
    %c0_i32 = arith.constant 0 : i32
    %c0_i32_0 = arith.constant 0 : i32
    %c0_i32_1 = arith.constant 0 : i32
    return %c0_i32, %c0_i32_0 : i32, i32
  }
  func.func @transform_9(%arg0: i32) -> (i32, i32) {
    %c0_i32 = arith.constant 0 : i32
    %c0_i32_0 = arith.constant 0 : i32
    return %arg0, %c0_i32 : i32, i32
  }
}

</mosaic_0001>

<bundles_post_ra>
// kernel: mlp4_forward.1
= control target key start
LH: loop header
LB: loop body
LE: loop exit
PB: predicated region body
PF: predicated region fallthrough
CT: control target
= control target key end

     0   :  { %14 = vsyncpa [#allocation3], 0  ;;  %s1369_s30 = smov 0   ;;  %s1502_s0 = inlined_call_operand.vmem [shape: f32[128,32], index: 0, kind: input, shape index: {}]   ;;  %s1503_s1 = inlined_call_operand.vmem [shape: bf16[32,128], index: 1, kind: input, shape index: {}]   ;;  %s1504_s2 = inlined_call_operand.vmem [shape: f32[1,128], index: 2, kind: input, shape index: {}]   ;;  %s1505_s3 = inlined_call_operand.vmem [shape: bf16[128,128], index: 3, kind: input, shape index: {}]   ;;  %s1506_s4 = inlined_call_operand.vmem [shape: f32[1,128], index: 4, kind: input, shape index: {}]   ;;  %s1507_s5 = inlined_call_operand.vmem [shape: bf16[128,128], index: 5, kind: input, shape index: {}]   ;;  %s1508_s6 = inlined_call_operand.vmem [shape: f32[1,128], index: 6, kind: input, shape index: {}]   ;;  %s1509_s7 = inlined_call_operand.hbm [shape: bf16[128,128], index: 7, kind: input, shape index: {}]   ;;  %s1510_s8 = inlined_call_operand.vmem [shape: f32[1,128], index: 8, kind: input, shape index: {}]   ;;  %s1511_s9 = inlined_call_operand.vmem [shape: bf16[128,128], index: 9, kind: output, shape index: {}]  }
   0x1 LB: > { %s1017_s10 = sadd.s32 4294967295, %s1314_s30   ;;  %p1019_p0 = scmp.ge.s32.totalorder %s1314_s30, 1  ;;  %s1314_s30 = sphi %s1369_s30, %s20_s30  }
   0x2   : > { %p245_p1 = scmp.lt.s32.totalorder %s1314_s30, 3  ;;  %s1316_s11 = smov [#allocation2]  }
   0x3   : > { %s275_s12 = sshll.u32 %s1316_s11, 4  ;;  %p1383_p3 = scmp.eq.s32.totalorder %s1017_s10, 0  ;;  %s276_s12 = int_to_ptr.vmem [resolvable:$true] %s275_s12 }
   0x4   : > { %p1377_p2 = pnand %p1019_p0, %p245_p1  ;;  %s1276_s18 = scalar_lea.hbm %s1509_s7, 1024 }
   0x5   : > { %s1516_s14 = scalar_select %p1383_p3, 1, 0 }
   0x6   : > { %s1515_s13 = scalar_select %p1377_p2, 1, 0 }
   0x7   : > { %p1233_p4 = pneg %p1377_p2  ;;  %p1277_p6 = scmp.ne.s32.totalorder %s1509_s7, %s1276_s18 }
   0x8   : > { %p1283_p10 = scmp.lt.u32.totalorder %s1276_s18, %s1509_s7 }
   0x9   : > { %p1391_p5 = pnand %p1383_p3, %p1233_p4 }
   0xb   : > { %p1278_p7 = pneg %p1391_p5 }
   0xd   : > { %p1279_p8 = pnand %p1278_p7, %p1277_p6 }
   0xf   : > { %p1280_p9 = pneg %p1279_p8 }
  0x11   : > { %p1285_p11 = pnand %p1283_p10, %p1280_p9 }
  0x13   : > { %1288 = shalt.err (!%p1285_p11)
}
  0x14   : > { %s1289_s23 = scalar_lea.vmem %s276_s12, 1024  ;;  %p1297_p1 = scmp.lt.s32.totalorder %s276_s12, %s276_s12 }
  0x15   : > { %p1290_p12 = scmp.ne.s32.totalorder %s276_s12, %s1289_s23  ;;  %p1298_p4 = scmp.lt.s32.totalorder %s1289_s23, %s1289_s23 }
  0x17   : > { %p1292_p13 = pnand %p1290_p12, %p1278_p7  ;;  %p1299_p3 = por %p1298_p4, %p1297_p1 }
  0x19   : > { %p1293_p0 = pneg %p1292_p13 }
  0x1b   : > { %p1300_p2 = pnand %p1299_p3, %p1293_p0 }
  0x1d   : > { %1303 = shalt.err (!%p1300_p2)
}
  0x1e   : > { %s1317_s24 = smov 64   ;;  %s1318_s25 = smov 4  }
  0x1f   : > { %1236 = dma.hbm_to_vmem [thread:$0]  (!%p1391_p5), %s1509_s7, 1024, %s276_s12, [#allocation3], %s1317_s24, %s1317_s24, %s1318_s25  }
  0x20   : > { %p1518_p6 = scmp.ne.s32.totalorder %s1515_s13, 0 }
  0x21   : > { %p1519_p8 = scmp.ne.s32.totalorder (!%p1518_p6), %s1516_s14, 0 }
  0x22   : > { %303 = sbr.rel (%p1518_p6) target bundleno = 946 (0x3b2), region = 56 }
  0x29   : > { %1309 = dma.done.wait (%p1519_p8), [#allocation3], 1024  }
  0x2a   : > { %1311 = vsyncadd (%p1519_p8), [#allocation3], 4294966272  ;;  %s1024_s28 = sshll.u32 %s1017_s10, 3  ;;  %v1250_v0 = vld [vmem:[%s1503_s1] sm:$0xff]   ;;  %v1251_v1 = vld [vmem:[%s1503_s1 + $0x8] sm:$0xff]   ;;  %vm387_vm0 = vcmask 261120  }
  0x2b   : > { %p340_p2 = scmp.lt.s32.totalorder %s1024_s28, 15  ;;  %1145 = vmatprep.subr.bf16.mxu0 %v1250_v0  ;;  %v1252_v9 = vld [vmem:[%s1505_s3] sm:$0xff]   ;;  %v1253_v11 = vld [vmem:[%s1505_s3 + $0x8] sm:$0xff]   ;;  %v1254_v14 = vld [vmem:[%s1505_s3 + $0x10] sm:$0xff]  }
  0x2c   : > { %1146 = vmatpush3.bf16.msra.mxu0 %v1250_v0  ;;  %1157 = vmatprep.subr.bf16.mxu1 %v1252_v9  ;;  %v1255_v16 = vld [vmem:[%s1505_s3 + $0x18] sm:$0xff]   ;;  %v1256_v18 = vld [vmem:[%s1505_s3 + $0x20] sm:$0xff]   ;;  %v1257_v19 = vld [vmem:[%s1505_s3 + $0x28] sm:$0xff]  }
  0x2d   : > { %s1521_s28 = smov (!%p340_p2, %s1024_s28), 15  ;;  %1147 = vmatprep.subr.bf16.mxu0 %v1251_v1  ;;  %1158 = vmatpush3.bf16.msra.mxu1 %v1252_v9  ;;  %v1258_v20 = vld [vmem:[%s1505_s3 + $0x30] sm:$0xff]   ;;  %v1259_v21 = vld [vmem:[%s1505_s3 + $0x38] sm:$0xff]   ;;  %v1260_v22 = vld [vmem:[%s1507_s5] sm:$0xff]  }
  0x2e   : > { %s1025_s29 = sshll.u32 %s1521_s28, 3  ;;  %1159 = vmatprep.subr.bf16.mxu1 %v1253_v11  ;;  %v1261_v23 = vld [vmem:[%s1507_s5 + $0x8] sm:$0xff]   ;;  %v1262_v24 = vld [vmem:[%s1507_s5 + $0x10] sm:$0xff]   ;;  %v1263_v25 = vld [vmem:[%s1507_s5 + $0x18] sm:$0xff]   ;;  %s1027_s19 = sshll.u32 %s1521_s28, 2 }
  0x2f   : > { %s343_s12 = scalar_lea.vmem %s1502_s0, %s1025_s29  ;;  %v1264_v26 = vld [vmem:[%s1507_s5 + $0x20] sm:$0xff]   ;;  %v1265_v27 = vld [vmem:[%s1507_s5 + $0x28] sm:$0xff]   ;;  %v1266_v57 = vld [vmem:[%s1507_s5 + $0x30] sm:$0xff]   ;;  %s349_s22 = scalar_lea.vmem %s1511_s9, %s1027_s19 }
  0x30   : > { %v352_v2 = vld [vmem:[%s343_s12] sm:$0xff]  ;;  %v353_v3 = vld [vmem:[%s343_s12 + $0x8] sm:$0xff]  ;;  %v354_v5 = vld [vmem:[%s343_s12 + $0x10] sm:$0xff]  ;;  %1148 = vmatpush3.bf16.msra.mxu0 %v1251_v1 }
  0x31   : > { %v360_v4 = vpack.c.bf16 %v353_v3, %v352_v2  ;;  %v355_v6 = vld [vmem:[%s343_s12 + $0x18] sm:$0xff]  ;;  %v356_v7 = vld [vmem:[%s343_s12 + $0x20] sm:$0xff]  ;;  %v357_v8 = vld [vmem:[%s343_s12 + $0x28] sm:$0xff]  ;;  %1160 = vmatpush3.bf16.msra.mxu1 %v1253_v11  ;;  %1181 = vmatprep.subr.bf16.mxu0 %v1260_v22 }
  0x32   : > { %v361_v10 = vpack.c.bf16 %v355_v6, %v354_v5  ;;  %v362_v12 = vpack.c.bf16 %v357_v8, %v356_v7  ;;  %v358_v13 = vld [vmem:[%s343_s12 + $0x30] sm:$0xff]  ;;  %v359_v15 = vld [vmem:[%s343_s12 + $0x38] sm:$0xff]  ;;  %1161 = vmatprep.subr.bf16.mxu1 %v1254_v14  ;;  %v1028_v28 = vld [vmem:[%s1504_s2] ss:$0 sm:$0xff] }
  0x33   : > { %1149 = vmatprep.mubr.msk.bf16.mxu0 %vm387_vm0, %v360_v4  ;;  %v363_v17 = vpack.c.bf16 %v359_v15, %v358_v13  ;;  %v1267_v58 = vld [vmem:[%s1507_s5 + $0x38] sm:$0xff]   ;;  %v1268_v59 = vld [vmem:[#allocation2] sm:$0xff]   ;;  %v1269_v60 = vld [vmem:[#allocation2 + $0x8] sm:$0xff]  }
  0x34   : > { %1150 = vmatmul.mubr.msk.bf16.vlgmr.msra.gmra.mrb[0].mxu0 %vm387_vm0, %v361_v10  ;;  %v1270_v61 = vld [vmem:[#allocation2 + $0x10] sm:$0xff]   ;;  %v1271_v62 = vld [vmem:[#allocation2 + $0x18] sm:$0xff]   ;;  %v1272_v63 = vld [vmem:[#allocation2 + $0x20] sm:$0xff]  }
  0x35   : > { %1153 = vmatprep.mubr.msk.bf16.mxu0 %vm387_vm0, %v362_v12  ;;  %1162 = vmatpush3.bf16.msra.mxu1 %v1254_v14  ;;  %v1273_v0 = vld [vmem:[#allocation2 + $0x28] sm:$0xff]   ;;  %v1035_v1 = vld [vmem:[%s1506_s4] ss:$0 sm:$0xff] }
  0x36   : > { %1163 = vmatprep.subr.bf16.mxu1 %v1255_v16  ;;  %1182 = vmatpush3.bf16.msra.mxu0 %v1260_v22 }
  0x37   : > { %1183 = vmatprep.subr.bf16.mxu0 %v1261_v23 }
  0x39   : > { %1164 = vmatpush3.bf16.msra.mxu1 %v1255_v16 }
  0x3a   : > { %1165 = vmatprep.subr.bf16.mxu1 %v1256_v18  ;;  %1184 = vmatpush3.bf16.msra.mxu0 %v1261_v23 }
  0x3b   : > { %1185 = vmatprep.subr.bf16.mxu0 %v1262_v24 }
  0x3c   : > { %1154 = vmatmul.mubr.msk.bf16.gmra.mrb[4].mxu0 %vm387_vm0, %v363_v17 }
  0x3d   : > { %1166 = vmatpush3.bf16.msra.mxu1 %v1256_v18 }
  0x3e   : > { %1167 = vmatprep.subr.bf16.mxu1 %v1257_v19  ;;  %1186 = vmatpush3.bf16.msra.mxu0 %v1262_v24 }
  0x3f   : > { %1187 = vmatprep.subr.bf16.mxu0 %v1263_v25 }
  0x41   : > { %1168 = vmatpush3.bf16.msra.mxu1 %v1257_v19 }
  0x42   : > { %1169 = vmatprep.subr.bf16.mxu1 %v1258_v20  ;;  %1188 = vmatpush3.bf16.msra.mxu0 %v1263_v25 }
  0x43   : > { %1189 = vmatprep.subr.bf16.mxu0 %v1264_v26 }
  0x45   : > { %1170 = vmatpush3.bf16.msra.mxu1 %v1258_v20 }
  0x46   : > { %1171 = vmatprep.subr.bf16.mxu1 %v1259_v21  ;;  %1190 = vmatpush3.bf16.msra.mxu0 %v1264_v26 }
  0x47   : > { %1191 = vmatprep.subr.bf16.mxu0 %v1265_v27 }
  0x49   : > { %1172 = vmatpush3.bf16.msra.mxu1 %v1259_v21 }
  0x4a   : > { %1192 = vmatpush3.bf16.msra.mxu0 %v1265_v27  ;;  %1205 = vmatprep.subr.bf16.mxu1 %v1268_v59 }
  0x4b   : > { %1193 = vmatprep.subr.bf16.mxu0 %v1266_v57 }
  0x4e   : > { %1194 = vmatpush3.bf16.msra.mxu0 %v1266_v57 }
  0x4f   : > { %1195 = vmatprep.subr.bf16.mxu0 %v1267_v58 }
  0x52   : > { %1196 = vmatpush3.bf16.msra.mxu0 %v1267_v58 }
 0x107   : > { %v1151_v29 = vpop.f32.mrb[0].mxu0 }
 0x108   : > { %v443_v30 = vadd.f32 %v1151_v29, %v1028_v28  ;;  %v434_v31 = vpop.f32.mrb[1].mxu0 }
 0x109   : > { %v435_v32 = vadd.f32 %v1028_v28, %v434_v31  ;;  %v1152_v33 = vpop.f32.mrb[2].mxu0  ;;  %v1275_v31 = vld [vmem:[#allocation2 + $0x38] sm:$0xff]  }
 0x10a   : > { %v446_v34 = vadd.f32 %v1152_v33, %v1028_v28  ;;  %v437_v35 = vpop.f32.mrb[3].mxu0  ;;  %v467_v37 = vmax.f32 %v443_v30, 0.0  ;;  %v1274_v30 = vld [vmem:[#allocation2 + $0x30] sm:$0xff]  }
 0x10b   : > { %v438_v36 = vadd.f32 %v1028_v28, %v437_v35  ;;  %v465_v39 = vmax.f32 %v435_v32, 0.0  ;;  %v1044_v32 = vld [vmem:[%s1508_s6] ss:$0 sm:$0xff] }
 0x10c   : > { %v468_v38 = vmax.f32 %v446_v34, 0.0 }
 0x10d   : > { %v466_v40 = vmax.f32 %v438_v36, 0.0 }
 0x10e   : > { %v474_v41 = vpack.c.bf16 %v468_v38, %v467_v37 }
 0x10f   : > { %v1155_v42 = vpop.f32.mrb[4].mxu0  ;;  %v473_v43 = vpack.c.bf16 %v466_v40, %v465_v39 }
 0x110   : > { %v459_v44 = vadd.f32 %v1155_v42, %v1028_v28  ;;  %v450_v45 = vpop.f32.mrb[5].mxu0 }
 0x111   : > { %v451_v46 = vadd.f32 %v1028_v28, %v450_v45  ;;  %v1156_v47 = vpop.f32.mrb[6].mxu0  ;;  %1173 = vmatprep.mubr.bf16.mxu1 %v473_v43 }
 0x112   : > { %v462_v48 = vadd.f32 %v1156_v47, %v1028_v28  ;;  %v453_v49 = vpop.f32.mrb[7].mxu0  ;;  %1174 = vmatmul.mubr.bf16.vlgmr.msra.gmra.mrb[0].mxu1 %v474_v41  ;;  %v471_v51 = vmax.f32 %v459_v44, 0.0 }
 0x113   : > { %v454_v50 = vadd.f32 %v1028_v28, %v453_v49  ;;  %v469_v53 = vmax.f32 %v451_v46, 0.0  ;;  %1206 = vmatpush3.bf16.msra.mxu1 %v1268_v59 }
 0x114   : > { %v472_v52 = vmax.f32 %v462_v48, 0.0  ;;  %1207 = vmatprep.subr.bf16.mxu1 %v1269_v60 }
 0x115   : > { %v470_v54 = vmax.f32 %v454_v50, 0.0 }
 0x116   : > { %v476_v55 = vpack.c.bf16 %v472_v52, %v471_v51 }
 0x117   : > { %v475_v56 = vpack.c.bf16 %v470_v54, %v469_v53  ;;  %1208 = vmatpush3.bf16.msra.mxu1 %v1269_v60 }
 0x118   : > { %1209 = vmatprep.subr.bf16.mxu1 %v1270_v61 }
 0x119   : > { %1177 = vmatprep.mubr.bf16.mxu1 %v475_v56 }
 0x11a   : > { %1178 = vmatmul.mubr.bf16.gmra.mrb[4].mxu1 %v476_v55 }
 0x11b   : > { %1210 = vmatpush3.bf16.msra.mxu1 %v1270_v61 }
 0x11c   : > { %1211 = vmatprep.subr.bf16.mxu1 %v1271_v62 }
 0x11f   : > { %1212 = vmatpush3.bf16.msra.mxu1 %v1271_v62  ;;  %v1053_v62 = vld [vmem:[%s1510_s8] ss:$0 sm:$0xff] }
 0x120   : > { %1213 = vmatprep.subr.bf16.mxu1 %v1272_v63 }
 0x123   : > { %1214 = vmatpush3.bf16.msra.mxu1 %v1272_v63 }
 0x124   : > { %1215 = vmatprep.subr.bf16.mxu1 %v1273_v0 }
 0x127   : > { %1216 = vmatpush3.bf16.msra.mxu1 %v1273_v0 }
 0x128   : > { %1217 = vmatprep.subr.bf16.mxu1 %v1274_v30 }
 0x12b   : > { %1218 = vmatpush3.bf16.msra.mxu1 %v1274_v30 }
 0x12c   : > { %1219 = vmatprep.subr.bf16.mxu1 %v1275_v31 }
 0x12f   : > { %1220 = vmatpush3.bf16.msra.mxu1 %v1275_v31 }
 0x1e5   : > { %v1175_v2 = vpop.f32.mrb[0].mxu1 }
 0x1e6   : > { %v591_v3 = vadd.f32 %v1175_v2, %v1035_v1  ;;  %v582_v4 = vpop.f32.mrb[1].mxu1 }
 0x1e7   : > { %v583_v5 = vadd.f32 %v1035_v1, %v582_v4  ;;  %v1176_v6 = vpop.f32.mrb[2].mxu1 }
 0x1e8   : > { %v594_v7 = vadd.f32 %v1176_v6, %v1035_v1  ;;  %v585_v8 = vpop.f32.mrb[3].mxu1  ;;  %v615_v10 = vmax.f32 %v591_v3, 0.0 }
 0x1e9   : > { %v586_v9 = vadd.f32 %v1035_v1, %v585_v8  ;;  %v613_v12 = vmax.f32 %v583_v5, 0.0 }
 0x1ea   : > { %v616_v11 = vmax.f32 %v594_v7, 0.0 }
 0x1eb   : > { %v614_v13 = vmax.f32 %v586_v9, 0.0 }
 0x1ec   : > { %v622_v14 = vpack.c.bf16 %v616_v11, %v615_v10 }
 0x1ed   : > { %v621_v15 = vpack.c.bf16 %v614_v13, %v613_v12  ;;  %v1179_v16 = vpop.f32.mrb[4].mxu1 }
 0x1ee   : > { %v607_v17 = vadd.f32 %v1179_v16, %v1035_v1  ;;  %v598_v18 = vpop.f32.mrb[5].mxu1 }
 0x1ef   : > { %v599_v19 = vadd.f32 %v1035_v1, %v598_v18  ;;  %v1180_v20 = vpop.f32.mrb[6].mxu1  ;;  %1197 = vmatprep.mubr.bf16.mxu0 %v621_v15 }
 0x1f0   : > { %v610_v21 = vadd.f32 %v1180_v20, %v1035_v1  ;;  %v601_v22 = vpop.f32.mrb[7].mxu1  ;;  %1198 = vmatmul.mubr.bf16.vlgmr.msra.gmra.mrb[8].mxu0 %v622_v14  ;;  %v619_v24 = vmax.f32 %v607_v17, 0.0 }
 0x1f1   : > { %v602_v23 = vadd.f32 %v1035_v1, %v601_v22  ;;  %v617_v26 = vmax.f32 %v599_v19, 0.0 }
 0x1f2   : > { %v620_v25 = vmax.f32 %v610_v21, 0.0 }
 0x1f3   : > { %v618_v27 = vmax.f32 %v602_v23, 0.0 }
 0x1f4   : > { %v624_v28 = vpack.c.bf16 %v620_v25, %v619_v24 }
 0x1f5   : > { %v623_v29 = vpack.c.bf16 %v618_v27, %v617_v26 }
 0x1f7   : > { %1201 = vmatprep.mubr.bf16.mxu0 %v623_v29 }
 0x1f8   : > { %1202 = vmatmul.mubr.bf16.gmra.mrb[12].mxu0 %v624_v28 }
 0x2c3   : > { %v1199_v33 = vpop.f32.mrb[8].mxu0 }
 0x2c4   : > { %v739_v34 = vadd.f32 %v1199_v33, %v1044_v32  ;;  %v730_v35 = vpop.f32.mrb[9].mxu0 }
 0x2c5   : > { %v731_v36 = vadd.f32 %v1044_v32, %v730_v35  ;;  %v1200_v37 = vpop.f32.mrb[10].mxu0 }
 0x2c6   : > { %v742_v38 = vadd.f32 %v1200_v37, %v1044_v32  ;;  %v733_v39 = vpop.f32.mrb[11].mxu0  ;;  %v763_v41 = vmax.f32 %v739_v34, 0.0 }
 0x2c7   : > { %v734_v40 = vadd.f32 %v1044_v32, %v733_v39  ;;  %v761_v43 = vmax.f32 %v731_v36, 0.0 }
 0x2c8   : > { %v764_v42 = vmax.f32 %v742_v38, 0.0 }
 0x2c9   : > { %v762_v44 = vmax.f32 %v734_v40, 0.0 }
 0x2ca   : > { %v770_v45 = vpack.c.bf16 %v764_v42, %v763_v41 }
 0x2cb   : > { %v769_v46 = vpack.c.bf16 %v762_v44, %v761_v43  ;;  %v1203_v47 = vpop.f32.mrb[12].mxu0 }
 0x2cc   : > { %v755_v48 = vadd.f32 %v1203_v47, %v1044_v32  ;;  %v746_v49 = vpop.f32.mrb[13].mxu0 }
 0x2cd   : > { %v747_v50 = vadd.f32 %v1044_v32, %v746_v49  ;;  %v1204_v51 = vpop.f32.mrb[14].mxu0  ;;  %1221 = vmatprep.mubr.bf16.mxu1 %v769_v46 }
 0x2ce   : > { %v758_v52 = vadd.f32 %v1204_v51, %v1044_v32  ;;  %v749_v53 = vpop.f32.mrb[15].mxu0  ;;  %1222 = vmatmul.mubr.bf16.vlgmr.msra.gmra.mrb[8].mxu1 %v770_v45  ;;  %v767_v55 = vmax.f32 %v755_v48, 0.0 }
 0x2cf   : > { %v750_v54 = vadd.f32 %v1044_v32, %v749_v53  ;;  %v765_v57 = vmax.f32 %v747_v50, 0.0 }
 0x2d0   : > { %v768_v56 = vmax.f32 %v758_v52, 0.0 }
 0x2d1   : > { %v766_v58 = vmax.f32 %v750_v54, 0.0 }
 0x2d2   : > { %v772_v59 = vpack.c.bf16 %v768_v56, %v767_v55 }
 0x2d3   : > { %v771_v60 = vpack.c.bf16 %v766_v58, %v765_v57 }
 0x2d5   : > { %1225 = vmatprep.mubr.bf16.mxu1 %v771_v60 }
 0x2d6   : > { %1226 = vmatmul.mubr.bf16.gmra.mrb[12].mxu1 %v772_v59 }
 0x3a1   : > { %v1223_v61 = vpop.f32.mrb[8].mxu1 }
 0x3a2   : > { %v878_v63 = vpop.f32.mrb[9].mxu1  ;;  %v887_v1 = vadd.f32 %v1223_v61, %v1053_v62 }
 0x3a3   : > { %v1224_v0 = vpop.f32.mrb[10].mxu1  ;;  %v879_v4 = vadd.f32 %v1053_v62, %v878_v63 }
 0x3a4   : > { %v890_v2 = vadd.f32 %v1224_v0, %v1053_v62  ;;  %v881_v3 = vpop.f32.mrb[11].mxu1 }
 0x3a5   : > { %v882_v5 = vadd.f32 %v1053_v62, %v881_v3 }
 0x3a6   : > { %v1088_v6 = vpack.c.bf16 %v890_v2, %v887_v1 }
 0x3a7   : > { %v1083_v7 = vpack.c.bf16 %v882_v5, %v879_v4 }
 0x3a8   : > { %1100 = vst [vmem:[%s349_s22 + $0x8] sm:$0xff] %v1088_v6  }
 0x3a9   : > { %1084 = vst [vmem:[%s349_s22] sm:$0xff] %v1083_v7   ;;  %v1227_v8 = vpop.f32.mrb[12].mxu1 }
 0x3aa   : > { %v894_v9 = vpop.f32.mrb[13].mxu1  ;;  %v903_v11 = vadd.f32 %v1227_v8, %v1053_v62 }
 0x3ab   : > { %v1228_v10 = vpop.f32.mrb[14].mxu1  ;;  %v895_v14 = vadd.f32 %v1053_v62, %v894_v9 }
 0x3ac   : > { %v906_v12 = vadd.f32 %v1228_v10, %v1053_v62  ;;  %v897_v13 = vpop.f32.mrb[15].mxu1 }
 0x3ad   : > { %v898_v15 = vadd.f32 %v1053_v62, %v897_v13 }
 0x3ae   : > { %v1098_v16 = vpack.c.bf16 %v906_v12, %v903_v11 }
 0x3af   : > { %v1093_v17 = vpack.c.bf16 %v898_v15, %v895_v14 }
 0x3b0   : > { %1102 = vst [vmem:[%s349_s22 + $0x18] sm:$0xff] %v1098_v16  }
 0x3b1   : > { %1101 = vst [vmem:[%s349_s22 + $0x10] sm:$0xff] %v1093_v17  }
 0x3b2 PF: > { %s20_s30 = sadd.s32 1, %s1314_s30  }
 0x3b3   : > { %p17_p3 = scmp.ge.s32.totalorder %s20_s30, 4  }
 0x3b5   :  { %19 = sbr.rel (!%p17_p3) target bundleno = 1 (0x1), region = 91 }
 0x3bc   :  { %971 = vsyncpa [#allocation3], 1 }
 0x3bd   :  { %973 = vsyncpa [#allocation3 + $0x1], 1 }

</bundles_post_ra>
